<compile_context>
chip_gen: v7x
topology: tpu7x:2x2x1
jax: 0.10.0
libtpu: 0.0.40
codegen_flags: <defaults>
</compile_context>

<pallas_src>
import functools

import jax
import jax.numpy as jnp
import numpy as np
from jax.experimental import pallas as pl
from jax.experimental.pallas import tpu as pltpu


def _round_up(x, m):
    return (x + m - 1) // m * m


# ---------------------------------------------------------------------------
# Residual block kernel: (dilated causal conv -> LayerNorm -> ReLU) x2 + skip
# ---------------------------------------------------------------------------
def _layernorm_relu(h, gamma, beta, eps):
    mean = jnp.mean(h, axis=-1, keepdims=True)
    var = jnp.mean(jnp.square(h - mean), axis=-1, keepdims=True)
    h = (h - mean) * jax.lax.rsqrt(var + eps)
    return jnp.maximum(h * gamma + beta, 0.0)


def _causal_conv(x2d, w_ref, bias, *, k, d, fuse):
    """Causal dilated conv of a (T, C_in) slab; w_ref is tap-major flat (k*C_in, C_out)."""
    T, c_in = x2d.shape
    pad = (k - 1) * d
    # Round the causal zero-pad up to a sublane multiple so the concat stays
    # 8-row aligned (review: align pad offsets to sublane multiples).
    pad_a = _round_up(pad, 8) if pad else 0
    if pad_a:
        xpad = jnp.concatenate(
            [jnp.zeros((pad_a, c_in), jnp.float32), x2d], axis=0)
    else:
        xpad = x2d
    # tap j reads x[t - (k-1-j)*d]  ->  xpad[t + pad_a - (k-1-j)*d]
    starts = [pad_a - (k - 1 - j) * d for j in range(k)]
    w = w_ref[...].astype(jnp.float32)                       # (k*C_in, C_out)
    if fuse:
        # Single deep MXU contraction: (T, k*C_in) @ (k*C_in, C_out).
        stacked = jnp.concatenate([xpad[s:s + T, :] for s in starts], axis=1)
        out = jnp.dot(stacked, w, preferred_element_type=jnp.float32)
    else:
        out = jnp.zeros((T, w.shape[1]), jnp.float32)
        for j, s in enumerate(starts):
            out = out + jnp.dot(xpad[s:s + T, :],
                                w[j * c_in:(j + 1) * c_in, :],
                                preferred_element_type=jnp.float32)
    return out + bias


def residual_block_kernel(x_ref,
                          w1_ref, b1_ref, g1_ref, be1_ref,
                          w2_ref, b2_ref, g2_ref, be2_ref,
                          out_ref, *, k, d, eps, fuse):
    """One (Bb, T, C) batch block per grid step.  The residual input is the same
    block that feeds conv1 (no second HBM read); both causal pads live in
    registers (no VMEM scratch)."""
    bb = x_ref.shape[0]
    b1 = b1_ref[...].astype(jnp.float32)
    g1 = g1_ref[...].astype(jnp.float32)
    be1 = be1_ref[...].astype(jnp.float32)
    b2 = b2_ref[...].astype(jnp.float32)
    g2 = g2_ref[...].astype(jnp.float32)
    be2 = be2_ref[...].astype(jnp.float32)

    for b in range(bb):                                      # small static unroll
        x2d = x_ref[b].astype(jnp.float32)                   # (T, C)
        h = _causal_conv(x2d, w1_ref, b1, k=k, d=d, fuse=fuse)
        h = _layernorm_relu(h, g1, be1, eps)
        h = _causal_conv(h, w2_ref, b2, k=k, d=2 * d, fuse=fuse)
        h = _layernorm_relu(h, g2, be2, eps)
        out_ref[b] = (h + x2d).astype(out_ref.dtype)


def _choose_batch_block(B, T, C, bytes_per_elem=4):
    # Keep the double-buffered in+out activation windows around <= ~4 MiB / step.
    per_row = 2 * 2 * T * C * bytes_per_elem
    bb = max(1, (4 * 1024 * 1024) // per_row)
    bb = min(bb, B)
    if B >= 2:                      # leave >= 2 grid steps so both v7x TCs work
        bb = min(bb, max(1, B // 2))
    while B % bb:
        bb -= 1
    return bb


def residual_block(x, block_params, *, kernel_size, dilation, eps=1e-8,
                   batch_block=None):
    """x: (B, T, C).  block_params = (w1, b1, g1, be1, w2, b2, g2, be2) with conv
    weights tap-major (k, C_in, C_out) (= PyTorch (O, I, 1, K) transposed to (K, I, O))."""
    w1, b1, g1, be1, w2, b2, g2, be2 = block_params
    B, T, C = x.shape
    k = kernel_size
    assert w1.shape == (k, C, C) and w2.shape == (k, C, C), (
        "residual connection requires in_channel == out_channel")

    bb = batch_block or _choose_batch_block(B, T, C)
    assert B % bb == 0
    fuse = (C % 128 == 0)           # fused tap contraction only when lane aligned

    w1f = w1.reshape(k * C, C)
    w2f = w2.reshape(k * C, C)

    kernel = functools.partial(residual_block_kernel, k=k, d=dilation,
                               eps=eps, fuse=fuse)

    act_spec = pl.BlockSpec((bb, T, C), lambda i: (i, 0, 0))
    w_spec = pl.BlockSpec((k * C, C), lambda i: (0, 0))
    v_spec = pl.BlockSpec((1, C), lambda i: (0, 0))

    # TODO(synk): for production T (e.g. 4096) add a T-tiling grid axis with a
    # (k-1)*d halo in the index_map to bound per-step VMEM residency on v7x.
    return pl.pallas_call(
        kernel,
        out_shape=jax.ShapeDtypeStruct((B, T, C), x.dtype),
        grid=(B // bb,),
        in_specs=[act_spec, w_spec, v_spec, v_spec, v_spec,
                  w_spec, v_spec, v_spec, v_spec],
        out_specs=act_spec,
        compiler_params=pltpu.CompilerParams(
            dimension_semantics=("parallel",)),
    )(x, w1f, b1, g1, be1, w2f, b2, g2, be2)


# ---------------------------------------------------------------------------
# Final Linear layer as a row-tiled Pallas matmul + bias
# ---------------------------------------------------------------------------
def final_linear_kernel(h_ref, w_ref, b_ref, out_ref):
    out_ref[...] = (jnp.dot(h_ref[...].astype(jnp.float32),
                            w_ref[...].astype(jnp.float32),
                            preferred_element_type=jnp.float32)
                    + b_ref[...].astype(jnp.float32)).astype(out_ref.dtype)


def final_linear(hidden, w_t, bias, *, row_block=512):
    """hidden: (M, C); w_t: (C, N) (transposed nn.Linear weight); bias: (1, N)."""
    M, C = hidden.shape
    N = w_t.shape[1]
    tm = min(row_block, _round_up(M, 8))
    Mp = _round_up(M, tm)
    h = jnp.pad(hidden, ((0, Mp - M), (0, 0))) if Mp != M else hidden
    out = pl.pallas_call(
        final_linear_kernel,
        out_shape=jax.ShapeDtypeStruct((Mp, N), hidden.dtype),
        grid=(Mp // tm,),
        in_specs=[pl.BlockSpec((tm, C), lambda i: (i, 0)),
                  pl.BlockSpec((C, N), lambda i: (0, 0)),
                  pl.BlockSpec((1, N), lambda i: (0, 0))],
        out_specs=pl.BlockSpec((tm, N), lambda i: (i, 0)),
        compiler_params=pltpu.CompilerParams(
            dimension_semantics=("parallel",)),
    )(h, w_t, bias)
    return out[:M]


# ---------------------------------------------------------------------------
# Full NextItNet_Decoder forward
# ---------------------------------------------------------------------------
def nextitnet_decoder(item_ids, params, *, kernel_size, dilations, onecall=False):
    """item_ids: (B, T) int32.  Mirrors NextItNet_Decoder.forward."""
    # Embedding gather is plain-JAX glue (a Pallas scalar-prefetch gather kernel
    # is possible but adds no value at these sizes).
    x = jnp.take(params["embedding"], item_ids, axis=0)      # (B, T, C)
    for blk, d in zip(params["blocks"], dilations):
        x = residual_block(x, blk, kernel_size=kernel_size, dilation=d)
    if onecall:
        hidden = x[:, -1, :]
    else:
        hidden = x.reshape(-1, x.shape[-1])
    return final_linear(hidden, params["final_w_t"], params["final_b"])


# ---------------------------------------------------------------------------
# Pure-JAX reference matching the PyTorch forward semantics
# ---------------------------------------------------------------------------
def _ref_residual_block(x, blk, k, d, eps=1e-8):
    w1, b1, g1, be1, w2, b2, g2, be2 = blk

    def conv(h, w, bias, dd):
        pad = (k - 1) * dd
        hp = jnp.pad(h, ((0, 0), (pad, 0), (0, 0)))
        T = h.shape[1]
        acc = jnp.zeros((h.shape[0], T, w.shape[2]), jnp.float32)
        for j in range(k):
            acc = acc + jnp.einsum("bti,io->bto", hp[:, j * dd:j * dd + T, :],
                                   w[j], precision=jax.lax.Precision.HIGHEST)
        return acc + bias

    def ln(h, g, be):
        m = h.mean(-1, keepdims=True)
        v = ((h - m) ** 2).mean(-1, keepdims=True)
        return (h - m) / jnp.sqrt(v + eps) * g + be

    h = jax.nn.relu(ln(conv(x, w1, b1, d), g1, be1))
    h = jax.nn.relu(ln(conv(h, w2, b2, 2 * d), g2, be2))
    return h + x


def ref_decoder(item_ids, params, *, kernel_size, dilations, onecall=False):
    x = jnp.take(params["embedding"], item_ids, axis=0)
    for blk, d in zip(params["blocks"], dilations):
        x = _ref_residual_block(x, blk, kernel_size, d)
    hidden = x[:, -1, :] if onecall else x.reshape(-1, x.shape[-1])
    return jnp.dot(hidden, params["final_w_t"],
                   precision=jax.lax.Precision.HIGHEST) + params["final_b"]


if __name__ == "__main__":
    # Small but lane-aligned config (C = 128 keeps stores lane-dense and
    # exercises the fused-tap MXU path).
    model_para = {
        "item_size": 64,
        "dilated_channels": 128,
        "dilations": [1, 2],
        "kernel_size": 3,
        "seq_len": 16,
        "batch": 2,
    }
    B = model_para["batch"]
    T = model_para["seq_len"]
    C = model_para["dilated_channels"]
    V = model_para["item_size"]
    K = model_para["kernel_size"]
    dilations = model_para["dilations"]

    key = jax.random.PRNGKey(0)
    key, k_ids, k_emb, k_fw = jax.random.split(key, 4)

    item_ids = jax.random.randint(k_ids, (B, T), 0, V, dtype=jnp.int32)

    stdv = float(np.sqrt(1.0 / V))
    embedding = jax.random.uniform(k_emb, (V, C), jnp.float32, -stdv, stdv)

    blocks = []
    for _ in dilations:
        key, kw1, kb1, kg1, kbe1, kw2, kb2, kg2, kbe2 = jax.random.split(key, 9)
        blocks.append((
            0.05 * jax.random.normal(kw1, (K, C, C), jnp.float32),
            0.02 * jax.random.normal(kb1, (1, C), jnp.float32),
            1.0 + 0.1 * jax.random.normal(kg1, (1, C), jnp.float32),
            0.1 * jax.random.normal(kbe1, (1, C), jnp.float32),
            0.05 * jax.random.normal(kw2, (K, C, C), jnp.float32),
            0.02 * jax.random.normal(kb2, (1, C), jnp.float32),
            1.0 + 0.1 * jax.random.normal(kg2, (1, C), jnp.float32),
            0.1 * jax.random.normal(kbe2, (1, C), jnp.float32),
        ))

    params = {
        "embedding": embedding,
        "blocks": blocks,
        "final_w_t": 0.01 * jax.random.normal(k_fw, (C, V), jnp.float32),
        "final_b": jnp.full((1, V), 0.1, jnp.float32),
    }

    out = nextitnet_decoder(item_ids, params, kernel_size=K, dilations=dilations)
    out = jax.block_until_ready(out)
    assert out.shape == (B * T, V)

    ref = jax.block_until_ready(
        ref_decoder(item_ids, params, kernel_size=K, dilations=dilations))
    np.testing.assert_allclose(np.asarray(out), np.asarray(ref),
                               rtol=5e-4, atol=1e-4)

    # also exercise the onecall=True path (last position only)
    out_last = jax.block_until_ready(
        nextitnet_decoder(item_ids, params, kernel_size=K, dilations=dilations,
                          onecall=True))
    ref_last = jax.block_until_ready(
        ref_decoder(item_ids, params, kernel_size=K, dilations=dilations,
                    onecall=True))
    np.testing.assert_allclose(np.asarray(out_last), np.asarray(ref_last),
                               rtol=5e-4, atol=1e-4)

    print("KERNEL_OK")
</pallas_src>

<mosaic_0001>
module attributes {stable_mosaic.version = 11 : i64} {
  func.func @residual_block_kernel(%arg0: i32, %arg1: memref<1x16x128xf32, #tpu.memory_space<vmem>>, %arg2: memref<384x128xf32, #tpu.memory_space<vmem>>, %arg3: memref<1x128xf32, #tpu.memory_space<vmem>>, %arg4: memref<1x128xf32, #tpu.memory_space<vmem>>, %arg5: memref<1x128xf32, #tpu.memory_space<vmem>>, %arg6: memref<384x128xf32, #tpu.memory_space<vmem>>, %arg7: memref<1x128xf32, #tpu.memory_space<vmem>>, %arg8: memref<1x128xf32, #tpu.memory_space<vmem>>, %arg9: memref<1x128xf32, #tpu.memory_space<vmem>>, %arg10: memref<1x16x128xf32, #tpu.memory_space<vmem>>) attributes {dimension_semantics = [#tpu.dimension_semantics<parallel>], iteration_bounds = array<i64: 2>, scalar_prefetch = 0 : i64, scratch_operands = 0 : i64, tpu.core_type = #tpu.core_type<tc>, window_params = [{transform_indices = @transform_0, window_bounds = array<i64: 1, 16, 128>}, {pipeline_mode = #tpu.pipeline_mode<synchronous>, transform_indices = @transform_1, window_bounds = array<i64: 384, 128>}, {pipeline_mode = #tpu.pipeline_mode<synchronous>, transform_indices = @transform_2, window_bounds = array<i64: 1, 128>}, {pipeline_mode = #tpu.pipeline_mode<synchronous>, transform_indices = @transform_3, window_bounds = array<i64: 1, 128>}, {pipeline_mode = #tpu.pipeline_mode<synchronous>, transform_indices = @transform_4, window_bounds = array<i64: 1, 128>}, {pipeline_mode = #tpu.pipeline_mode<synchronous>, transform_indices = @transform_5, window_bounds = array<i64: 384, 128>}, {pipeline_mode = #tpu.pipeline_mode<synchronous>, transform_indices = @transform_6, window_bounds = array<i64: 1, 128>}, {pipeline_mode = #tpu.pipeline_mode<synchronous>, transform_indices = @transform_7, window_bounds = array<i64: 1, 128>}, {pipeline_mode = #tpu.pipeline_mode<synchronous>, transform_indices = @transform_8, window_bounds = array<i64: 1, 128>}, {transform_indices = @transform_9, window_bounds = array<i64: 1, 16, 128>}]} {
    %c0 = arith.constant 0 : index
    %c0_0 = arith.constant 0 : index
    %0 = vector.load %arg3[%c0, %c0_0] : memref<1x128xf32, #tpu.memory_space<vmem>>, vector<1x128xf32>
    %c0_1 = arith.constant 0 : index
    %c0_2 = arith.constant 0 : index
    %1 = vector.load %arg4[%c0_1, %c0_2] : memref<1x128xf32, #tpu.memory_space<vmem>>, vector<1x128xf32>
    %c0_3 = arith.constant 0 : index
    %c0_4 = arith.constant 0 : index
    %2 = vector.load %arg5[%c0_3, %c0_4] : memref<1x128xf32, #tpu.memory_space<vmem>>, vector<1x128xf32>
    %c0_5 = arith.constant 0 : index
    %c0_6 = arith.constant 0 : index
    %3 = vector.load %arg7[%c0_5, %c0_6] : memref<1x128xf32, #tpu.memory_space<vmem>>, vector<1x128xf32>
    %c0_7 = arith.constant 0 : index
    %c0_8 = arith.constant 0 : index
    %4 = vector.load %arg8[%c0_7, %c0_8] : memref<1x128xf32, #tpu.memory_space<vmem>>, vector<1x128xf32>
    %c0_9 = arith.constant 0 : index
    %c0_10 = arith.constant 0 : index
    %5 = vector.load %arg9[%c0_9, %c0_10] : memref<1x128xf32, #tpu.memory_space<vmem>>, vector<1x128xf32>
    %c0_11 = arith.constant 0 : index
    %c0_12 = arith.constant 0 : index
    %c0_13 = arith.constant 0 : index
    %6 = vector.load %arg1[%c0_11, %c0_12, %c0_13] : memref<1x16x128xf32, #tpu.memory_space<vmem>>, vector<1x16x128xf32>
    %7 = vector.shape_cast %6 : vector<1x16x128xf32> to vector<16x128xf32>
    %cst = arith.constant 0.000000e+00 : f32
    %8 = vector.broadcast %cst : f32 to vector<8x128xf32>
    %9 = tpu.concatenate %8, %7 in 0 : vector<8x128xf32>, vector<16x128xf32> -> vector<24x128xf32>
    %c0_14 = arith.constant 0 : index
    %c0_15 = arith.constant 0 : index
    %10 = vector.load %arg2[%c0_14, %c0_15] : memref<384x128xf32, #tpu.memory_space<vmem>>, vector<384x128xf32>
    %11 = vector.extract_strided_slice %9 {offsets = [6, 0], sizes = [16, 128], strides = [1, 1]} : vector<24x128xf32> to vector<16x128xf32>
    %12 = vector.extract_strided_slice %9 {offsets = [7, 0], sizes = [16, 128], strides = [1, 1]} : vector<24x128xf32> to vector<16x128xf32>
    %13 = vector.extract_strided_slice %9 {offsets = [8, 0], sizes = [16, 128], strides = [1, 1]} : vector<24x128xf32> to vector<16x128xf32>
    %14 = tpu.concatenate %11, %12, %13 in 1 : vector<16x128xf32>, vector<16x128xf32>, vector<16x128xf32> -> vector<16x384xf32>
    %cst_16 = arith.constant dense<0.000000e+00> : vector<16x128xf32>
    %15 = tpu.matmul %14, %10, %cst_16 {dimension_numbers = #tpu.dot_dimension_numbers<[1], [0], [0], [1], [0, 0, 1, 1], [], []>} : vector<16x384xf32>, vector<384x128xf32>, vector<16x128xf32> -> vector<16x128xf32>
    %16 = vector.broadcast %0 : vector<1x128xf32> to vector<16x128xf32>
    %17 = arith.addf %15, %16 : vector<16x128xf32>
    %cst_17 = arith.constant dense<0.000000e+00> : vector<16xf32>
    %18 = vector.multi_reduction <add>, %17, %cst_17 [1] : vector<16x128xf32> to vector<16xf32>
    %19 = vector.shape_cast %18 : vector<16xf32> to vector<16x1xf32>
    %cst_18 = arith.constant 1.280000e+02 : f32
    %20 = vector.broadcast %cst_18 : f32 to vector<16x1xf32>
    %21 = arith.divf %19, %20 : vector<16x1xf32>
    %22 = vector.broadcast %21 : vector<16x1xf32> to vector<16x128xf32>
    %23 = arith.subf %17, %22 : vector<16x128xf32>
    %24 = arith.mulf %23, %23 : vector<16x128xf32>
    %cst_19 = arith.constant dense<0.000000e+00> : vector<16xf32>
    %25 = vector.multi_reduction <add>, %24, %cst_19 [1] : vector<16x128xf32> to vector<16xf32>
    %26 = vector.shape_cast %25 : vector<16xf32> to vector<16x1xf32>
    %cst_20 = arith.constant 1.280000e+02 : f32
    %27 = vector.broadcast %cst_20 : f32 to vector<16x1xf32>
    %28 = arith.divf %26, %27 : vector<16x1xf32>
    %29 = vector.broadcast %21 : vector<16x1xf32> to vector<16x128xf32>
    %30 = arith.subf %17, %29 : vector<16x128xf32>
    %cst_21 = arith.constant 9.99999993E-9 : f32
    %31 = vector.broadcast %cst_21 : f32 to vector<16x1xf32>
    %32 = arith.addf %28, %31 : vector<16x1xf32>
    %33 = math.rsqrt %32 : vector<16x1xf32>
    %34 = vector.broadcast %33 : vector<16x1xf32> to vector<16x128xf32>
    %35 = arith.mulf %30, %34 : vector<16x128xf32>
    %36 = vector.broadcast %1 : vector<1x128xf32> to vector<16x128xf32>
    %37 = arith.mulf %35, %36 : vector<16x128xf32>
    %38 = vector.broadcast %2 : vector<1x128xf32> to vector<16x128xf32>
    %39 = arith.addf %37, %38 : vector<16x128xf32>
    %cst_22 = arith.constant 0.000000e+00 : f32
    %40 = vector.broadcast %cst_22 : f32 to vector<16x128xf32>
    %41 = arith.maximumf %39, %40 : vector<16x128xf32>
    %cst_23 = arith.constant 0.000000e+00 : f32
    %42 = vector.broadcast %cst_23 : f32 to vector<8x128xf32>
    %43 = tpu.concatenate %42, %41 in 0 : vector<8x128xf32>, vector<16x128xf32> -> vector<24x128xf32>
    %c0_24 = arith.constant 0 : index
    %c0_25 = arith.constant 0 : index
    %44 = vector.load %arg6[%c0_24, %c0_25] : memref<384x128xf32, #tpu.memory_space<vmem>>, vector<384x128xf32>
    %45 = vector.extract_strided_slice %43 {offsets = [4, 0], sizes = [16, 128], strides = [1, 1]} : vector<24x128xf32> to vector<16x128xf32>
    %46 = vector.extract_strided_slice %43 {offsets = [6, 0], sizes = [16, 128], strides = [1, 1]} : vector<24x128xf32> to vector<16x128xf32>
    %47 = vector.extract_strided_slice %43 {offsets = [8, 0], sizes = [16, 128], strides = [1, 1]} : vector<24x128xf32> to vector<16x128xf32>
    %48 = tpu.concatenate %45, %46, %47 in 1 : vector<16x128xf32>, vector<16x128xf32>, vector<16x128xf32> -> vector<16x384xf32>
    %cst_26 = arith.constant dense<0.000000e+00> : vector<16x128xf32>
    %49 = tpu.matmul %48, %44, %cst_26 {dimension_numbers = #tpu.dot_dimension_numbers<[1], [0], [0], [1], [0, 0, 1, 1], [], []>} : vector<16x384xf32>, vector<384x128xf32>, vector<16x128xf32> -> vector<16x128xf32>
    %50 = vector.broadcast %3 : vector<1x128xf32> to vector<16x128xf32>
    %51 = arith.addf %49, %50 : vector<16x128xf32>
    %cst_27 = arith.constant dense<0.000000e+00> : vector<16xf32>
    %52 = vector.multi_reduction <add>, %51, %cst_27 [1] : vector<16x128xf32> to vector<16xf32>
    %53 = vector.shape_cast %52 : vector<16xf32> to vector<16x1xf32>
    %cst_28 = arith.constant 1.280000e+02 : f32
    %54 = vector.broadcast %cst_28 : f32 to vector<16x1xf32>
    %55 = arith.divf %53, %54 : vector<16x1xf32>
    %56 = vector.broadcast %55 : vector<16x1xf32> to vector<16x128xf32>
    %57 = arith.subf %51, %56 : vector<16x128xf32>
    %58 = arith.mulf %57, %57 : vector<16x128xf32>
    %cst_29 = arith.constant dense<0.000000e+00> : vector<16xf32>
    %59 = vector.multi_reduction <add>, %58, %cst_29 [1] : vector<16x128xf32> to vector<16xf32>
    %60 = vector.shape_cast %59 : vector<16xf32> to vector<16x1xf32>
    %cst_30 = arith.constant 1.280000e+02 : f32
    %61 = vector.broadcast %cst_30 : f32 to vector<16x1xf32>
    %62 = arith.divf %60, %61 : vector<16x1xf32>
    %63 = vector.broadcast %55 : vector<16x1xf32> to vector<16x128xf32>
    %64 = arith.subf %51, %63 : vector<16x128xf32>
    %cst_31 = arith.constant 9.99999993E-9 : f32
    %65 = vector.broadcast %cst_31 : f32 to vector<16x1xf32>
    %66 = arith.addf %62, %65 : vector<16x1xf32>
    %67 = math.rsqrt %66 : vector<16x1xf32>
    %68 = vector.broadcast %67 : vector<16x1xf32> to vector<16x128xf32>
    %69 = arith.mulf %64, %68 : vector<16x128xf32>
    %70 = vector.broadcast %4 : vector<1x128xf32> to vector<16x128xf32>
    %71 = arith.mulf %69, %70 : vector<16x128xf32>
    %72 = vector.broadcast %5 : vector<1x128xf32> to vector<16x128xf32>
    %73 = arith.addf %71, %72 : vector<16x128xf32>
    %cst_32 = arith.constant 0.000000e+00 : f32
    %74 = vector.broadcast %cst_32 : f32 to vector<16x128xf32>
    %75 = arith.maximumf %73, %74 : vector<16x128xf32>
    %76 = arith.addf %75, %7 : vector<16x128xf32>
    %c0_33 = arith.constant 0 : index
    %c0_34 = arith.constant 0 : index
    %c0_35 = arith.constant 0 : index
    %77 = vector.load %arg10[%c0_33, %c0_34, %c0_35] : memref<1x16x128xf32, #tpu.memory_space<vmem>>, vector<1x16x128xf32>
    %78 = vector.shape_cast %77 : vector<1x16x128xf32> to vector<16x128xf32>
    %79 = vector.shape_cast %76 : vector<16x128xf32> to vector<1x16x128xf32>
    tpu.vector_store %arg10[%c0_33, %c0_34, %c0_35], %79 {strides = array<i32>} : memref<1x16x128xf32, #tpu.memory_space<vmem>>, vector<1x16x128xf32>,
    return
  }
  func.func @transform_0(%arg0: i32) -> (i32, i32, i32) {
    %c0_i32 = arith.constant 0 : i32
    %c0_i32_0 = arith.constant 0 : i32
    %c0_i32_1 = arith.constant 0 : i32
    return %arg0, %c0_i32, %c0_i32_0 : i32, i32, i32
  }
  func.func @transform_1(%arg0: i32) -> (i32, i32) {
    %c0_i32 = arith.constant 0 : i32
    %c0_i32_0 = arith.constant 0 : i32
    %c0_i32_1 = arith.constant 0 : i32
    return %c0_i32, %c0_i32_0 : i32, i32
  }
  func.func @transform_2(%arg0: i32) -> (i32, i32) {
    %c0_i32 = arith.constant 0 : i32
    %c0_i32_0 = arith.constant 0 : i32
    %c0_i32_1 = arith.constant 0 : i32
    return %c0_i32, %c0_i32_0 : i32, i32
  }
  func.func @transform_3(%arg0: i32) -> (i32, i32) {
    %c0_i32 = arith.constant 0 : i32
    %c0_i32_0 = arith.constant 0 : i32
    %c0_i32_1 = arith.constant 0 : i32
    return %c0_i32, %c0_i32_0 : i32, i32
  }
  func.func @transform_4(%arg0: i32) -> (i32, i32) {
    %c0_i32 = arith.constant 0 : i32
    %c0_i32_0 = arith.constant 0 : i32
    %c0_i32_1 = arith.constant 0 : i32
    return %c0_i32, %c0_i32_0 : i32, i32
  }
  func.func @transform_5(%arg0: i32) -> (i32, i32) {
    %c0_i32 = arith.constant 0 : i32
    %c0_i32_0 = arith.constant 0 : i32
    %c0_i32_1 = arith.constant 0 : i32
    return %c0_i32, %c0_i32_0 : i32, i32
  }
  func.func @transform_6(%arg0: i32) -> (i32, i32) {
    %c0_i32 = arith.constant 0 : i32
    %c0_i32_0 = arith.constant 0 : i32
    %c0_i32_1 = arith.constant 0 : i32
    return %c0_i32, %c0_i32_0 : i32, i32
  }
  func.func @transform_7(%arg0: i32) -> (i32, i32) {
    %c0_i32 = arith.constant 0 : i32
    %c0_i32_0 = arith.constant 0 : i32
    %c0_i32_1 = arith.constant 0 : i32
    return %c0_i32, %c0_i32_0 : i32, i32
  }
  func.func @transform_8(%arg0: i32) -> (i32, i32) {
    %c0_i32 = arith.constant 0 : i32
    %c0_i32_0 = arith.constant 0 : i32
    %c0_i32_1 = arith.constant 0 : i32
    return %c0_i32, %c0_i32_0 : i32, i32
  }
  func.func @transform_9(%arg0: i32) -> (i32, i32, i32) {
    %c0_i32 = arith.constant 0 : i32
    %c0_i32_0 = arith.constant 0 : i32
    %c0_i32_1 = arith.constant 0 : i32
    return %arg0, %c0_i32, %c0_i32_0 : i32, i32, i32
  }
}

</mosaic_0001>

<bundles_post_ra>
// kernel: tpu_custom_call.1
= control target key start
LH: loop header
LB: loop body
LE: loop exit
PB: predicated region body
PF: predicated region fallthrough
CT: control target
= control target key end

     0   :  { %14 = vsyncpa [#allocation3], 0  ;;  %s1996_s0 = inlined_call_operand.hbm [shape: f32[2,16,128], index: 0, kind: input, shape index: {}]   ;;  %s1997_s1 = inlined_call_operand.hbm [shape: f32[384,128], index: 1, kind: input, shape index: {}]   ;;  %s1998_s2 = inlined_call_operand.vmem [shape: f32[1,128], index: 2, kind: input, shape index: {}]   ;;  %s1999_s3 = inlined_call_operand.vmem [shape: f32[1,128], index: 3, kind: input, shape index: {}]   ;;  %s2000_s4 = inlined_call_operand.vmem [shape: f32[1,128], index: 4, kind: input, shape index: {}]   ;;  %s2001_s5 = inlined_call_operand.hbm [shape: f32[384,128], index: 5, kind: input, shape index: {}]   ;;  %s2002_s6 = inlined_call_operand.vmem [shape: f32[1,128], index: 6, kind: input, shape index: {}]   ;;  %s2003_s7 = inlined_call_operand.vmem [shape: f32[1,128], index: 7, kind: input, shape index: {}]   ;;  %s2004_s8 = inlined_call_operand.vmem [shape: f32[1,128], index: 8, kind: input, shape index: {}]   ;;  %s2005_s9 = inlined_call_operand.hbm [shape: f32[2,16,128], index: 9, kind: output, shape index: {}]  }
   0x1   :  { %16 = vsyncpa [#allocation3 + $0x1], 0 }
   0x2   :  { %17 = vsyncpa [#allocation6], 0 }
   0x3   :  { %18 = vsyncpa [#allocation4], 0 }
   0x4   :  { %20 = vsyncpa [#allocation4 + $0x1], 0  ;;  %s1684_s30 = smov 0   ;;  %s1686_s10 = smov 0  }
   0x5   :  { %s1688_s11 = smov 0   ;;  %s1690_s12 = smov 0  }
   0x6 LB: > { %s1705_s13 = sadd.s32 4294967295, %s1623_s12   ;;  %s1051_s14 = sadd.s32 4294967294, %s1623_s12   ;;  %s1623_s12 = sphi %s1690_s12, %s2032_s12   ;;  %s1619_s11 = sphi %s1688_s11, %s2031_s11   ;;  %s1615_s10 = sphi %s1686_s10, %s2030_s10   ;;  %s1611_s30 = sphi %s1684_s30, %s2029_s30  }
   0x7   : > { %p46_p0 = scmp.ne.s32.totalorder %s1615_s10, %s1611_s30  ;;  %p2006_p1 = scmp.eq.s32.totalorder %s1705_s13, 0 }
   0x8   : > { %p244_p3 = scmp.eq.s32.totalorder %s1051_s14, 1  ;;  %p1052_p5 = scmp.ge.s32.totalorder %s1623_s12, 1 }
   0x9   : > { %p1714_p4 = por %p2006_p1, %p46_p0  ;;  %p251_p7 = scmp.lt.s32.totalorder %s1623_s12, 3 }
   0xa   : > { %p1719_p6 = por %p244_p3, %p46_p0  ;;  %s1625_s18 = smov [#allocation5]  }
   0xb   : > { %s2012_s15 = scalar_select %p1714_p4, 1, 0 }
   0xc   : > { %s2013_s16 = scalar_select %p1719_p6, 1, 0 }
   0xd   : > { %p1724_p8 = pnand %p1052_p5, %p251_p7  ;;  %s263_s19 = sshll.u32 %s1625_s18, 4  ;;  %s1728_s19 = int_to_ptr.vmem [resolvable:$true] %s263_s19 }
   0xe   : > { %2014 = sst [smem:[#allocation12_spill]] %s2013_s16  ;;  %s1626_s21 = smov [#allocation7]  }
   0xf   : > { %p1399_p9 = pneg %p1724_p8  ;;  %s285_s22 = sshll.u32 %s1626_s21, 4  ;;  %s1739_s22 = int_to_ptr.vmem [resolvable:$true] %s285_s22 }
  0x10   : > { %s1467_s25 = scalar_lea.hbm %s1997_s1, 6144 }
  0x11   : > { %p1735_p11 = pnand %p1399_p9, %p2006_p1  ;;  %p1468_p12 = scmp.ne.s32.totalorder %s1997_s1, %s1467_s25 }
  0x12   : > { %p1474_p5 = scmp.lt.u32.totalorder %s1467_s25, %s1997_s1 }
  0x13   : > { %p1469_p13 = pneg %p1735_p11 }
  0x15   : > { %p1470_p0 = pnand %p1469_p13, %p1468_p12 }
  0x17   : > { %p1471_p3 = pneg %p1470_p0 }
  0x19   : > { %p1476_p7 = pnand %p1474_p5, %p1471_p3 }
  0x1b   : > { %1479 = shalt.err (!%p1476_p7)
}
  0x1c   : > { %s1480_s14 = scalar_lea.vmem %s1728_s19, 6144  ;;  %p1488_p2 = scmp.lt.s32.totalorder %s1728_s19, %s1728_s19 }
  0x1d   : > { %p1481_p9 = scmp.ne.s32.totalorder %s1728_s19, %s1480_s14  ;;  %p1489_p12 = scmp.lt.s32.totalorder %s1480_s14, %s1480_s14 }
  0x1f   : > { %p1483_p10 = pnand %p1481_p9, %p1469_p13  ;;  %p1490_p0 = por %p1489_p12, %p1488_p2 }
  0x21   : > { %p1484_p1 = pneg %p1483_p10 }
  0x23   : > { %p1491_p6 = pnand %p1490_p0, %p1484_p1 }
  0x25   : > { %1494 = shalt.err (!%p1491_p6)
}
  0x26   : > { %s2008_s18 = smov 128   ;;  %s2009_s21 = smov 8  }
  0x27   : > { %1402 = dma.hbm_to_vmem [thread:$0]  (!%p1735_p11), %s1997_s1, 6144, %s1728_s19, [#allocation6], %s2008_s18, %s2008_s18, %s2009_s21  }
  0x28   : > { %s1495_s27 = scalar_lea.hbm %s2001_s5, 6144 }
  0x29   : > { %p1496_p1 = scmp.ne.s32.totalorder %s2001_s5, %s1495_s27  ;;  %p1502_p10 = scmp.lt.u32.totalorder %s1495_s27, %s2001_s5 }
  0x2b   : > { %p1498_p2 = pnand %p1496_p1, %p1469_p13 }
  0x2d   : > { %p1499_p6 = pneg %p1498_p2 }
  0x2f   : > { %p1504_p3 = pnand %p1502_p10, %p1499_p6 }
  0x31   : > { %1507 = shalt.err (!%p1504_p3)
}
  0x32   : > { %s1508_s19 = scalar_lea.vmem %s1739_s22, 6144  ;;  %p1516_p12 = scmp.lt.s32.totalorder %s1739_s22, %s1739_s22 }
  0x33   : > { %p1509_p5 = scmp.ne.s32.totalorder %s1739_s22, %s1508_s19  ;;  %p1517_p0 = scmp.lt.s32.totalorder %s1508_s19, %s1508_s19 }
  0x35   : > { %p1511_p7 = pnand %p1509_p5, %p1469_p13  ;;  %p1518_p1 = por %p1517_p0, %p1516_p12 }
  0x37   : > { %p1512_p9 = pneg %p1511_p7 }
  0x39   : > { %p1519_p2 = pnand %p1518_p1, %p1512_p9 }
  0x3b   : > { %1522 = shalt.err (!%p1519_p2)
}
  0x3c   : > { %1405 = dma.hbm_to_vmem [thread:$0]  (!%p1735_p11), %s2001_s5, 6144, %s1739_s22, [#allocation6], %s2008_s18, %s2008_s18, %s2009_s21  }
  0x3d   : > { %s1800_s20 = sadd.s32 1, %s1623_s12   ;;  %s33_s24 = sadd.s32 1, %s1619_s11 }
  0x3e   : > { %s30_s25 = ssub.s32 %s1623_s12, %s1800_s20  ;;  %p40_p13 = scmp.ne.s32.totalorder %s1619_s11, %s1615_s10 }
  0x3f   : > { %p31_p6 = scmp.eq.s32.totalorder %s30_s25, 0  ;;  %p41_p10 = scmp.eq.s32.totalorder %s1623_s12, 0 }
  0x40   : > { %p2017_p3 = scmp.eq.s32.totalorder %s1705_s13, 1  ;;  %p1416_p7 = scmp.lt.s32.totalorder %s1623_s12, 2 }
  0x41   : > { %s1816_s27 = scalar_select %p31_p6, %s1619_s11, %s33_s24  }
  0x42   : > { %p1810_p5 = por %p2017_p3, %p40_p13  ;;  %p42_p9 = por %p41_p10, %p40_p13 }
  0x43   : > { %s308_s28 = sand.u32 1, %s1619_s11   ;;  %s1075_s22 = sshll.u32 %s1623_s12, 8 }
  0x44   : > { %s2018_s26 = scalar_select %p1810_p5, 1, 0 }
  0x45   : > { %s1056_s29 = sshll.u32 %s308_s28, 4  ;;  %s1823_s16 = scalar_lea.hbm %s1996_s0, %s1075_s22 }
  0x46   : > { %s312_s23 = scalar_lea.vmem [#allocation2], %s1056_s29  ;;  %p1827_p11 = pnand %p1416_p7, %p42_p9 }
  0x47   : > { %s319_s25 = sshll.u32 %s312_s23, 4  ;;  %s1831_s18 = scalar_lea.sflag [#allocation3], %s308_s28  ;;  %s1825_s25 = int_to_ptr.vmem [resolvable:$true] %s319_s25 }
  0x48   : > { %s1523_s21 = scalar_lea.hbm %s1823_s16, 256  ;;  %p1525_p0 = pneg %p1827_p11 }
  0x49   : > { %p1524_p12 = scmp.ne.s32.totalorder %s1823_s16, %s1523_s21  ;;  %s1528_s14 = scalar_lea.hbm %s1996_s0, 512 }
  0x4a   : > { %p1529_p13 = scmp.lt.u32.totalorder %s1823_s16, %s1996_s0  ;;  %p1530_p6 = scmp.lt.u32.totalorder %s1528_s14, %s1523_s21 }
  0x4b   : > { %p1526_p1 = pnand %p1525_p0, %p1524_p12  ;;  %p1532_p3 = scmp.lt.u32.totalorder %s1523_s21, %s1823_s16 }
  0x4c   : > { %p1531_p10 = por %p1530_p6, %p1529_p13 }
  0x4d   : > { %p1527_p2 = pneg %p1526_p1 }
  0x4e   : > { %p1533_p7 = por %p1532_p3, %p1531_p10 }
  0x50   : > { %p1534_p9 = pnand %p1533_p7, %p1527_p2 }
  0x52   : > { %1537 = shalt.err (!%p1534_p9)
}
  0x53   : > { %s1538_s28 = scalar_lea.vmem %s1825_s25, 256  ;;  %s1629_s29 = smov [#allocation2]  }
  0x54   : > { %p1539_p12 = scmp.ne.s32.totalorder %s1825_s25, %s1538_s28  ;;  %s1543_s22 = sshll.u32 %s1629_s29, 4  ;;  %s1544_s22 = int_to_ptr.vmem [resolvable:$false] %s1543_s22 }
  0x55   : > { %s1545_s19 = scalar_lea.vmem %s1544_s22, 512  ;;  %p1546_p4 = scmp.lt.s32.totalorder %s1825_s25, %s1544_s22 }
  0x56   : > { %p1541_p1 = pnand %p1539_p12, %p1525_p0  ;;  %p1547_p13 = scmp.lt.s32.totalorder %s1545_s19, %s1538_s28 }
  0x58   : > { %p1542_p5 = pneg %p1541_p1  ;;  %p1548_p6 = por %p1547_p13, %p1546_p4 }
  0x5a   : > { %p1549_p10 = pnand %p1548_p6, %p1542_p5 }
  0x5c   : > { %1552 = shalt.err (!%p1549_p10)
}
  0x5d   : > { %s2020_s21 = smov 8   ;;  %s2021_s14 = smov 128  }
  0x5e   : > { %1409 = dma.hbm_to_vmem [thread:$0]  (!%p1827_p11), %s1823_s16, 256, %s1825_s25, %s1831_s18, %s2021_s14, %s2021_s14, %s2020_s21  }
  0x5f   : > { %331 = sbr.rel (%p1724_p8) target bundleno = 1237 (0x4d5), region = 56  ;;  %s1865_s23 = sand.u32 (!%p1724_p8), 1, %s1615_s10  }
  0x60   : > { %s1060_s28 = sshll.u32 (!%p1724_p8), %s1865_s23, 4  ;;  %s334_s29 = scalar_lea.sflag (!%p1724_p8), [#allocation3], %s1865_s23 }
  0x61   : > { %s1871_s24 = scalar_lea.vmem (!%p1724_p8), [#allocation2], %s1060_s28  ;;  %p2022_p4 = scmp.ne.s32.totalorder (!%p1724_p8), %s2012_s15, 0 }
  0x66   : > { %1598 = dma.done.wait (%p2022_p4), %s334_s29, 256  }
  0x67   : > { %1600 = vsyncadd (%p2022_p4), %s334_s29, 4294967040  ;;  %p2023_p5 = scmp.eq.s32.totalorder %s1705_s13, 0 }
  0x69   : > { %1602 = dma.done.wait (%p2023_p5), [#allocation6], 12288   ;;  %p2024_p8 = pmov %p2023_p5 }
  0x6a   : > { %v404_v0 = vld [vmem:[#allocation5 + $0x80] sm:$0xff]  ;;  %v405_v1 = vld [vmem:[#allocation5 + $0x88] sm:$0xff]  ;;  %v406_v9 = vld [vmem:[#allocation5 + $0x90] sm:$0xff]  ;;  %v1630_v47 = vmov 0.0   ;;  %vm439_vm0 = vcmask 1046528   ;;  %vm445_vm1 = vcmask 1045504  }
  0x6b   : > { %1604 = vsyncadd (%p2024_p8), [#allocation6], 4294955008  ;;  %v388_v2 = vld [vmem:[#allocation5] sm:$0xff]  ;;  %v1259_v3 = vpack.c.bf16 %v405_v1, %v404_v0  ;;  %v389_v4 = vld [vmem:[#allocation5 + $0x8] sm:$0xff]  ;;  %v440_v48 = vrot.slane %v1630_v47, 1  ;;  %vm455_vm2 = vcmask 1041408  }
  0x6c   : > { %v420_v5 = vld [vmem:[#allocation5 + $0x100] sm:$0xff]  ;;  %v421_v6 = vld [vmem:[#allocation5 + $0x108] sm:$0xff]  ;;  %v1261_v7 = vpack.c.bf16 %v389_v4, %v388_v2  ;;  %v407_v10 = vld [vmem:[#allocation5 + $0x98] sm:$0xff]  ;;  %vm723_vm3 = vcmask 1043456   ;;  %s1076_s17 = sshll.u32 %s1705_s13, 8  ;;  %s379_s18 = scalar_lea.vmem [#allocation8], %s1060_s28 }
  0x6d   : > { %v1291_v8 = vpack.c.bf16 %v421_v6, %v420_v5  ;;  %v390_v11 = vld [vmem:[#allocation5 + $0x10] sm:$0xff]  ;;  %1260 = vmatprep.subr.bf16.mxu0 %v1259_v3  ;;  %v1263_v12 = vpack.c.bf16 %v407_v10, %v406_v9  ;;  %v391_v13 = vld [vmem:[#allocation5 + $0x18] sm:$0xff]  ;;  %v408_v18 = vld [vmem:[#allocation5 + $0xa0] sm:$0xff]  ;;  %s959_s16 = sshll.u32 %s379_s18, 4  ;;  %s1949_s19 = scalar_lea.hbm %s2005_s9, %s1076_s17  ;;  %s1951_s16 = int_to_ptr.vmem [resolvable:$true] %s959_s16 }
  0x6e   : > { %v422_v14 = vld [vmem:[#allocation5 + $0x110] sm:$0xff]  ;;  %v423_v15 = vld [vmem:[#allocation5 + $0x118] sm:$0xff]  ;;  %1262 = vmatpush3.bf16.msra.mxu0 %v1261_v7  ;;  %v1265_v16 = vpack.c.bf16 %v391_v13, %v390_v11  ;;  %v409_v19 = vld [vmem:[#allocation5 + $0xa8] sm:$0xff]  ;;  %s946_s21 = scalar_lea.sflag [#allocation4], %s1865_s23  ;;  %s1553_s13 = scalar_lea.vmem %s1951_s16, 256 }
  0x6f   : > { %1292 = vmatprep.subr.bf16.mxu1 %v1291_v8  ;;  %v1295_v17 = vpack.c.bf16 %v423_v15, %v422_v14  ;;  %v392_v20 = vld [vmem:[#allocation5 + $0x20] sm:$0xff]  ;;  %1264 = vmatprep.subr.bf16.mxu0 %v1263_v12  ;;  %v1267_v21 = vpack.c.bf16 %v409_v19, %v408_v18  ;;  %v393_v22 = vld [vmem:[#allocation5 + $0x28] sm:$0xff]  ;;  %v410_v26 = vld [vmem:[#allocation5 + $0xb0] sm:$0xff]  ;;  %p1554_p11 = scmp.ne.s32.totalorder %s1951_s16, %s1553_s13  ;;  %p2025_p0 = scmp.ne.s32.totalorder %s2018_s26, 0 }
  0x70   : > { %1294 = vmatpush3.bf16.msra.mxu1 %v1291_v8  ;;  %v424_v23 = vld [vmem:[#allocation5 + $0x120] sm:$0xff]  ;;  %v425_v24 = vld [vmem:[#allocation5 + $0x128] sm:$0xff]  ;;  %v411_v27 = vld [vmem:[#allocation5 + $0xb8] sm:$0xff]  ;;  %v1269_v30 = vpack.c.bf16 %v393_v22, %v392_v20  ;;  %s1631_s28 = smov [#allocation8]  }
  0x71   : > { %1296 = vmatprep.subr.bf16.mxu1 %v1295_v17  ;;  %v1299_v25 = vpack.c.bf16 %v425_v24, %v424_v23  ;;  %v426_v28 = vld [vmem:[#allocation5 + $0x130] sm:$0xff]  ;;  %v427_v29 = vld [vmem:[#allocation5 + $0x138] sm:$0xff]  ;;  %v1271_v31 = vpack.c.bf16 %v411_v27, %v410_v26  ;;  %v412_v35 = vld [vmem:[#allocation5 + $0xc0] sm:$0xff]  ;;  %p1555_p2 = pnand %p1554_p11, %p2025_p0  ;;  %s1557_s14 = sshll.u32 %s1631_s28, 4  ;;  %s1558_s14 = int_to_ptr.vmem [resolvable:$false] %s1557_s14 }
  0x72   : > { %1266 = vmatpush3.bf16.msra.mxu0 %v1265_v16  ;;  %v394_v32 = vld [vmem:[#allocation5 + $0x30] sm:$0xff]  ;;  %v395_v33 = vld [vmem:[#allocation5 + $0x38] sm:$0xff]  ;;  %v1303_v34 = vpack.c.bf16 %v427_v29, %v426_v28  ;;  %v413_v36 = vld [vmem:[#allocation5 + $0xc8] sm:$0xff]  ;;  %s1559_s29 = scalar_lea.vmem %s1558_s14, 512  ;;  %p1560_p7 = scmp.lt.s32.totalorder %s1951_s16, %s1558_s14 }
  0x73   : > { %1268 = vmatprep.subr.bf16.mxu0 %v1267_v21  ;;  %v428_v37 = vld [vmem:[#allocation5 + $0x140] sm:$0xff]  ;;  %v429_v38 = vld [vmem:[#allocation5 + $0x148] sm:$0xff]  ;;  %v1273_v39 = vpack.c.bf16 %v395_v33, %v394_v32  ;;  %v1275_v40 = vpack.c.bf16 %v413_v36, %v412_v35  ;;  %v414_v44 = vld [vmem:[#allocation5 + $0xd0] sm:$0xff]  ;;  %p1556_p3 = pneg %p1555_p2  ;;  %p1561_p9 = scmp.lt.s32.totalorder %s1559_s29, %s1553_s13 }
  0x74   : > { %1298 = vmatpush3.bf16.msra.mxu1 %v1295_v17  ;;  %v396_v41 = vld [vmem:[#allocation5 + $0x40] sm:$0xff]  ;;  %v397_v42 = vld [vmem:[#allocation5 + $0x48] sm:$0xff]  ;;  %v1307_v43 = vpack.c.bf16 %v429_v38, %v428_v37  ;;  %v415_v45 = vld [vmem:[#allocation5 + $0xd8] sm:$0xff] }
  0x75   : > { %1300 = vmatprep.subr.bf16.mxu1 %v1299_v25  ;;  %v430_v46 = vld [vmem:[#allocation5 + $0x150] sm:$0xff]  ;;  %v431_v49 = vld [vmem:[#allocation5 + $0x158] sm:$0xff]  ;;  %v1277_v52 = vpack.c.bf16 %v397_v42, %v396_v41  ;;  %v1279_v55 = vpack.c.bf16 %v415_v45, %v414_v44  ;;  %v416_v61 = vld [vmem:[#allocation5 + $0xe0] sm:$0xff]  ;;  %p1562_p12 = por %p1561_p9, %p1560_p7 }
  0x76   : > { %1270 = vmatpush3.bf16.msra.mxu0 %v1269_v30  ;;  %v1883_v50 = vld [vmem:[%s1871_s24] sm:$0xff]  ;;  %v1886_v51 = vld [vmem:[%s1871_s24 + $0x8] sm:$0xff]  ;;  %v1311_v60 = vpack.c.bf16 %v431_v49, %v430_v46 }
  0x77   : > { %1272 = vmatprep.subr.bf16.mxu0 %v1271_v31  ;;  %v441_v53 = vrot.slane %v1883_v50, 1  ;;  %v443_v54 = vrot.slane %v1886_v51, 1  ;;  %v398_v56 = vld [vmem:[#allocation5 + $0x50] sm:$0xff]  ;;  %v399_v57 = vld [vmem:[#allocation5 + $0x58] sm:$0xff]  ;;  %v446_v58 = vrot.slane %v1883_v50, 2  ;;  %v447_v59 = vrot.slane %v1886_v51, 2  ;;  %p1563_p1 = pnand %p1562_p12, %p1556_p3 }
  0x78   : > { %1302 = vmatpush3.bf16.msra.mxu1 %v1299_v25  ;;  %v417_v62 = vld [vmem:[#allocation5 + $0xe8] sm:$0xff]  ;;  %v432_v1 = vld [vmem:[#allocation5 + $0x160] sm:$0xff]  ;;  %v1281_v7 = vpack.c.bf16 %v399_v57, %v398_v56  ;;  %v418_v14 = vld [vmem:[#allocation5 + $0xf0] sm:$0xff]  ;;  %v456_v25 = vrot.slane %v1630_v47, 6  ;;  %v457_v26 = vrot.slane %v1883_v50, 6  ;;  %v465_v30 = vrot.slane %v1886_v51, 6 }
  0x79   : > { %1304 = vmatprep.subr.bf16.mxu1 %v1303_v34  ;;  %v442_v63 = vsel %vm439_vm0, %v440_v48, %v441_v53  ;;  %v444_v0 = vsel %vm439_vm0, %v441_v53, %v443_v54  ;;  %v433_v2 = vld [vmem:[#allocation5 + $0x168] sm:$0xff]  ;;  %v448_v5 = vsel %vm445_vm1, %v446_v58, %v447_v59  ;;  %v462_v6 = vrot.slane %v446_v58, 6  ;;  %v400_v10 = vld [vmem:[#allocation5 + $0x60] sm:$0xff]  ;;  %v419_v15 = vld [vmem:[#allocation5 + $0xf8] sm:$0xff] }
  0x7a   : > { %1274 = vmatpush3.bf16.msra.mxu0 %v1273_v39  ;;  %v459_v3 = vrot.slane %v442_v63, 6  ;;  %v460_v4 = vrot.slane %v444_v0, 6  ;;  %v463_v8 = vrot.slane %v448_v5, 6  ;;  %v1283_v9 = vpack.c.bf16 %v417_v62, %v416_v61  ;;  %v401_v11 = vld [vmem:[#allocation5 + $0x68] sm:$0xff]  ;;  %v434_v17 = vld [vmem:[#allocation5 + $0x170] sm:$0xff]  ;;  %v435_v18 = vld [vmem:[#allocation5 + $0x178] sm:$0xff] }
  0x7b   : > { %1276 = vmatprep.subr.bf16.mxu0 %v1275_v40  ;;  %v1315_v13 = vpack.c.bf16 %v433_v2, %v432_v1  ;;  %v1285_v19 = vpack.c.bf16 %v401_v11, %v400_v10  ;;  %v1287_v20 = vpack.c.bf16 %v419_v15, %v418_v14  ;;  %v402_v21 = vld [vmem:[#allocation5 + $0x70] sm:$0xff]  ;;  %v403_v22 = vld [vmem:[#allocation5 + $0x78] sm:$0xff]  ;;  %v1319_v23 = vpack.c.bf16 %v435_v18, %v434_v17  ;;  %v1064_v37 = vld [vmem:[%s1998_s2] ss:$0 sm:$0xff] }
  0x7c   : > { %1306 = vmatpush3.bf16.msra.mxu1 %v1303_v34  ;;  %v461_v12 = vsel %vm455_vm2, %v459_v3, %v460_v4  ;;  %v464_v16 = vsel %vm455_vm2, %v462_v6, %v463_v8  ;;  %v1289_v24 = vpack.c.bf16 %v403_v22, %v402_v21  ;;  %v467_v27 = vrot.slane %v443_v54, 6  ;;  %v684_v58 = vld [vmem:[#allocation7 + $0x80] sm:$0xff]  ;;  %v701_v62 = vld [vmem:[#allocation7 + $0x108] sm:$0xff]  ;;  %v686_v3 = vld [vmem:[#allocation7 + $0x90] sm:$0xff] }
  0x7d   : > { %1308 = vmatprep.subr.bf16.mxu1 %v1307_v43  ;;  %541 = vmatprep.mubr.f32.mxu0 %v461_v12  ;;  %v469_v28 = vrot.slane %v447_v59, 6  ;;  %v458_v29 = vsel %vm455_vm2, %v456_v25, %v457_v26  ;;  %v466_v33 = vsel %vm455_vm2, %v457_v26, %v465_v30  ;;  %v685_v59 = vld [vmem:[#allocation7 + $0x88] sm:$0xff]  ;;  %v668_v63 = vld [vmem:[#allocation7] sm:$0xff]  ;;  %v702_v5 = vld [vmem:[#allocation7 + $0x110] sm:$0xff] }
  0x7e   : > { %1278 = vmatpush3.bf16.msra.mxu0 %v1277_v52  ;;  %1221 = vmatprep.mubr.f32.mxu1 %v464_v16  ;;  %v468_v31 = vsel %vm455_vm2, %v460_v4, %v467_v27  ;;  %v1323_v61 = vpack.c.bf16 %v685_v59, %v684_v58  ;;  %v669_v0 = vld [vmem:[#allocation7 + $0x8] sm:$0xff]  ;;  %v687_v4 = vld [vmem:[#allocation7 + $0x98] sm:$0xff]  ;;  %v688_v12 = vld [vmem:[#allocation7 + $0xa0] sm:$0xff] }
  0x7f   : > { %1280 = vmatprep.subr.bf16.mxu0 %v1279_v55  ;;  %v470_v32 = vsel %vm455_vm2, %v463_v8, %v469_v28  ;;  %v1325_v2 = vpack.c.bf16 %v669_v0, %v668_v63  ;;  %v1327_v6 = vpack.c.bf16 %v687_v4, %v686_v3  ;;  %v670_v8 = vld [vmem:[#allocation7 + $0x10] sm:$0xff]  ;;  %v704_v14 = vld [vmem:[#allocation7 + $0x120] sm:$0xff]  ;;  %v705_v16 = vld [vmem:[#allocation7 + $0x128] sm:$0xff] }
  0x80   : > { %1310 = vmatpush3.bf16.msra.mxu1 %v1307_v43  ;;  %v672_v17 = vld [vmem:[#allocation7 + $0x20] sm:$0xff]  ;;  %v673_v18 = vld [vmem:[#allocation7 + $0x28] sm:$0xff]  ;;  %v690_v21 = vld [vmem:[#allocation7 + $0xb0] sm:$0xff] }
  0x81   : > { %1312 = vmatprep.subr.bf16.mxu1 %v1311_v60  ;;  %v691_v22 = vld [vmem:[#allocation7 + $0xb8] sm:$0xff]  ;;  %v674_v26 = vld [vmem:[#allocation7 + $0x30] sm:$0xff]  ;;  %v692_v30 = vld [vmem:[#allocation7 + $0xc0] sm:$0xff] }
  0x82   : > { %1282 = vmatpush3.bf16.msra.mxu0 %v1281_v7  ;;  %v703_v7 = vld [vmem:[#allocation7 + $0x118] sm:$0xff]  ;;  %v680_v58 = vld [vmem:[#allocation7 + $0x60] sm:$0xff]  ;;  %v681_v59 = vld [vmem:[#allocation7 + $0x68] sm:$0xff] }
  0x83   : > { %1284 = vmatprep.subr.bf16.mxu0 %v1283_v9  ;;  %v671_v9 = vld [vmem:[#allocation7 + $0x18] sm:$0xff]  ;;  %v1359_v10 = vpack.c.bf16 %v703_v7, %v702_v5  ;;  %v714_v0 = vld [vmem:[#allocation7 + $0x170] sm:$0xff] }
  0x84   : > { %1314 = vmatpush3.bf16.msra.mxu1 %v1311_v60  ;;  %v700_v60 = vld [vmem:[#allocation7 + $0x100] sm:$0xff]  ;;  %v1329_v11 = vpack.c.bf16 %v671_v9, %v670_v8  ;;  %v707_v25 = vld [vmem:[#allocation7 + $0x138] sm:$0xff]  ;;  %v682_v3 = vld [vmem:[#allocation7 + $0x70] sm:$0xff] }
  0x85   : > { %1316 = vmatprep.subr.bf16.mxu1 %v1315_v13  ;;  %v1355_v1 = vpack.c.bf16 %v701_v62, %v700_v60  ;;  %v675_v27 = vld [vmem:[#allocation7 + $0x38] sm:$0xff]  ;;  %v698_v62 = vld [vmem:[#allocation7 + $0xf0] sm:$0xff] }
  0x86   : > { %1286 = vmatpush3.bf16.msra.mxu0 %v1285_v19  ;;  %v1363_v19 = vpack.c.bf16 %v705_v16, %v704_v14  ;;  %v699_v63 = vld [vmem:[#allocation7 + $0xf8] sm:$0xff]  ;;  %v1065_v14 = vld [vmem:[%s1999_s3] ss:$0 sm:$0xff] }
  0x87   : > { %1288 = vmatprep.subr.bf16.mxu0 %v1287_v20  ;;  %v1333_v20 = vpack.c.bf16 %v673_v18, %v672_v17  ;;  %v683_v4 = vld [vmem:[#allocation7 + $0x78] sm:$0xff]  ;;  %v1066_v16 = vld [vmem:[%s2000_s4] ss:$0 sm:$0xff] }
  0x88   : > { %1318 = vmatpush3.bf16.msra.mxu1 %v1315_v13  ;;  %v689_v13 = vld [vmem:[#allocation7 + $0xa8] sm:$0xff] }
  0x89   : > { %1320 = vmatprep.subr.bf16.mxu1 %v1319_v23  ;;  %v1331_v15 = vpack.c.bf16 %v689_v13, %v688_v12 }
  0x8a   : > { %1290 = vmatpush3.bf16.msra.mxu0 %v1289_v24  ;;  %v1335_v24 = vpack.c.bf16 %v691_v22, %v690_v21 }
  0x8b   : > { %1324 = vmatprep.subr.bf16.mxu0 %v1323_v61  ;;  %v1349_v61 = vpack.c.bf16 %v681_v59, %v680_v58 }
  0x8c   : > { %1322 = vmatpush3.bf16.msra.mxu1 %v1319_v23  ;;  %v706_v23 = vld [vmem:[#allocation7 + $0x130] sm:$0xff] }
  0x8d   : > { %542 = vmatmul.mubr.f32.vlgmr.msra.gmra.mrb[0].mxu0 %v458_v29  ;;  %1356 = vmatprep.subr.bf16.mxu1 %v1355_v1  ;;  %v1367_v28 = vpack.c.bf16 %v707_v25, %v706_v23  ;;  %v1337_v29 = vpack.c.bf16 %v675_v27, %v674_v26 }
  0x8e   : > { %546 = vmatprep.mubr.f32.mxu0 %v468_v31  ;;  %1326 = vmatpush3.bf16.msra.mxu0 %v1325_v2  ;;  %v693_v31 = vld [vmem:[#allocation7 + $0xc8] sm:$0xff]  ;;  %v715_v2 = vld [vmem:[#allocation7 + $0x178] sm:$0xff] }
  0x8f   : > { %1222 = vmatmul.mubr.f32.vlgmr.msra.gmra.mrb[0].mxu1 %v470_v32  ;;  %1328 = vmatprep.subr.bf16.mxu0 %v1327_v6  ;;  %v708_v32 = vld [vmem:[#allocation7 + $0x140] sm:$0xff]  ;;  %v1383_v5 = vpack.c.bf16 %v715_v2, %v714_v0  ;;  %v1353_v6 = vpack.c.bf16 %v683_v4, %v682_v3 }
  0x90   : > { %1358 = vmatpush3.bf16.msra.mxu1 %v1355_v1  ;;  %v1351_v1 = vpack.c.bf16 %v699_v63, %v698_v62 }
  0x91   : > { %547 = vmatmul.mubr.f32.gmra.mrb[2].mxu0 %v466_v33  ;;  %1360 = vmatprep.subr.bf16.mxu1 %v1359_v10  ;;  %v1339_v33 = vpack.c.bf16 %v693_v31, %v692_v30  ;;  %v733_v30 = vrot.slane %v1630_v47, 4 }
  0x92   : > { %1330 = vmatpush3.bf16.msra.mxu0 %v1329_v11 }
  0x93   : > { %1332 = vmatprep.subr.bf16.mxu0 %v1331_v15 }
  0x94   : > { %1362 = vmatpush3.bf16.msra.mxu1 %v1359_v10 }
  0x95   : > { %1364 = vmatprep.subr.bf16.mxu1 %v1363_v19 }
  0x96   : > { %1334 = vmatpush3.bf16.msra.mxu0 %v1333_v20 }
  0x97   : > { %1336 = vmatprep.subr.bf16.mxu0 %v1335_v24  ;;  %v718_v24 = vrot.slane %v1630_v47, 2 }
  0x98   : > { %1366 = vmatpush3.bf16.msra.mxu1 %v1363_v19 }
  0x99   : > { %1368 = vmatprep.subr.bf16.mxu1 %v1367_v28 }
  0x9a   : > { %1338 = vmatpush3.bf16.msra.mxu0 %v1337_v29 }
  0x9b   : > { %1340 = vmatprep.subr.bf16.mxu0 %v1339_v33 }
  0x9c   : > { %1370 = vmatpush3.bf16.msra.mxu1 %v1367_v28 }
 0x160   : > { %v1109_v34 = vpop.f32.mrb[0].mxu0 }
 0x161   : > { %v1110_v35 = vpop.f32.mrb[1].mxu0 }
 0x162   : > { %v1223_v36 = vpop.f32.mrb[0].mxu1  ;;  %v1111_v38 = vadd.f32 %v1110_v35, %v1109_v34  ;;  %v709_v34 = vld [vmem:[#allocation7 + $0x148] sm:$0xff]  ;;  %v676_v35 = vld [vmem:[#allocation7 + $0x40] sm:$0xff] }
 0x163   : > { %v618_v39 = vpop.f32.mrb[1].mxu1 }
 0x164   : > { %v1112_v40 = vpop.f32.mrb[2].mxu0  ;;  %v544_v41 = vadd.f32 %v1111_v38, %v1064_v37 }
 0x165   : > { %v1113_v42 = vpop.f32.mrb[3].mxu0 }
 0x166   : > { %v619_v43 = vadd.f32 %v618_v39, %v544_v41  ;;  %v1114_v44 = vadd.f32 %v1113_v42, %v1112_v40  ;;  %v694_v39 = vld [vmem:[#allocation7 + $0xd0] sm:$0xff]  ;;  %v695_v40 = vld [vmem:[#allocation7 + $0xd8] sm:$0xff] }
 0x167   : > { %v710_v41 = vld [vmem:[#allocation7 + $0x150] sm:$0xff]  ;;  %v1343_v42 = vpack.c.bf16 %v695_v40, %v694_v39 }
 0x168   : > { %v549_v45 = vadd.f32 %v1114_v44, %v1064_v37  ;;  %627 = vadd.xlane.f32.xlu0 %v619_v43  ;;  %v1371_v37 = vpack.c.bf16 %v709_v34, %v708_v32  ;;  %v678_v44 = vld [vmem:[#allocation7 + $0x50] sm:$0xff] }
 0x16a   : > { %v624_v46 = vadd.f32 %v1223_v36, %v549_v45  ;;  %v677_v36 = vld [vmem:[#allocation7 + $0x48] sm:$0xff]  ;;  %1372 = vmatprep.subr.bf16.mxu1 %v1371_v37  ;;  %v679_v45 = vld [vmem:[#allocation7 + $0x58] sm:$0xff] }
 0x16b   : > { %v1341_v38 = vpack.c.bf16 %v677_v36, %v676_v35  ;;  %1374 = vmatpush3.bf16.msra.mxu1 %v1371_v37 }
 0x16c   : > { %629 = vadd.xlane.f32.xlu0 %v624_v46 }
 0x16d   : > { %1342 = vmatpush3.bf16.msra.mxu0 %v1341_v38 }
 0x16e   : > { %1344 = vmatprep.subr.bf16.mxu0 %v1343_v42 }
 0x1f5   : > { %v628_v48 = vpop.xlane.xlu0 %627 }
 0x1f6   : > { %v632_v49 = vmul.f32 0.0078125, %v628_v48  ;;  %v1345_v48 = vpack.c.bf16 %v679_v45, %v678_v44  ;;  %v1067_v45 = vld [vmem:[%s2002_s6] ss:$0 sm:$0xff] }
 0x1f8   : > { %v1907_v52 = vsub.f32 %v619_v43, %v632_v49  ;;  %v711_v43 = vld [vmem:[#allocation7 + $0x158] sm:$0xff]  ;;  %v696_v49 = vld [vmem:[#allocation7 + $0xe0] sm:$0xff]  ;;  %1346 = vmatpush3.bf16.msra.mxu0 %v1345_v48 }
 0x1f9   : > { %v630_v53 = vpop.xlane.xlu0 %629 }
 0x1fa   : > { %v633_v54 = vmul.f32 0.0078125, %v630_v53  ;;  %v636_v55 = vmul.f32 %v1907_v52, %v1907_v52  ;;  %v697_v53 = vld [vmem:[#allocation7 + $0xe8] sm:$0xff] }
 0x1fc   : > { %v1911_v56 = vsub.f32 %v624_v46, %v633_v54  ;;  %638 = vadd.xlane.f32.xlu1 %v636_v55  ;;  %v1375_v46 = vpack.c.bf16 %v711_v43, %v710_v41  ;;  %v712_v54 = vld [vmem:[#allocation7 + $0x160] sm:$0xff]  ;;  %v1347_v55 = vpack.c.bf16 %v697_v53, %v696_v49 }
 0x1fe   : > { %v637_v57 = vmul.f32 %v1911_v56, %v1911_v56  ;;  %1376 = vmatprep.subr.bf16.mxu1 %v1375_v46  ;;  %1348 = vmatprep.subr.bf16.mxu0 %v1347_v55 }
 0x1ff   : > { %1378 = vmatpush3.bf16.msra.mxu1 %v1375_v46  ;;  %1350 = vmatpush3.bf16.msra.mxu0 %v1349_v61 }
 0x200   : > { %640 = vadd.xlane.f32.xlu1 %v637_v57  ;;  %v713_v57 = vld [vmem:[#allocation7 + $0x168] sm:$0xff]  ;;  %1352 = vmatprep.subr.bf16.mxu0 %v1351_v1 }
 0x201   : > { %v1379_v60 = vpack.c.bf16 %v713_v57, %v712_v54 }
 0x203   : > { %1380 = vmatprep.subr.bf16.mxu1 %v1379_v60  ;;  %1354 = vmatpush3.bf16.msra.mxu0 %v1353_v6 }
 0x204   : > { %1382 = vmatpush3.bf16.msra.mxu1 %v1379_v60 }
 0x205   : > { %1384 = vmatprep.subr.bf16.mxu1 %v1383_v5 }
 0x208   : > { %1386 = vmatpush3.bf16.msra.mxu1 %v1383_v5 }
 0x289   : > { %v639_v7 = vpop.xlane.xlu1 %638 }
 0x28a   : > { %v642_v8 = vmul.f32 0.0078125, %v639_v7 }
 0x28c   : > { %v644_v9 = vadd.f32 1e-08, %v642_v8 }
 0x28d   : > { %v641_v10 = vpop.xlane.xlu1 %640 }
 0x28e   : > { %1459 = vrsqrt.f32 %v644_v9  ;;  %v643_v11 = vmul.f32 0.0078125, %v641_v10 }
 0x290   : > { %v645_v12 = vadd.f32 1e-08, %v643_v11  ;;  %v1068_v11 = vld [vmem:[%s2003_s7] ss:$0 sm:$0xff] }
 0x292   : > { %1461 = vrsqrt.f32 %v645_v12 }
 0x298   : > { %v1460_v13 = vpop.eup %1459 }
 0x299   : > { %v648_v15 = vmul.f32 %v1460_v13, %v1907_v52  ;;  %v1069_v13 = vld [vmem:[%s2004_s8] ss:$0 sm:$0xff] }
 0x29b   : > { %v656_v17 = vmul.f32 %v1065_v14, %v648_v15 }
 0x29c   : > { %v1462_v18 = vpop.eup %1461 }
 0x29d   : > { %v649_v19 = vmul.f32 %v1462_v18, %v1911_v56  ;;  %v664_v20 = vadd.f32 %v1066_v16, %v656_v17 }
 0x29f   : > { %v657_v21 = vmul.f32 %v1065_v14, %v649_v19  ;;  %v666_v22 = vmax.f32 %v664_v20, 0.0 }
 0x2a1   : > { %v665_v23 = vadd.f32 %v1066_v16, %v657_v21  ;;  %v719_v25 = vrot.slane %v666_v22, 2  ;;  %v724_v27 = vrot.slane %v666_v22, 4 }
 0x2a3   : > { %v667_v26 = vmax.f32 %v665_v23, 0.0  ;;  %v720_v28 = vsel %vm445_vm1, %v718_v24, %v719_v25  ;;  %v738_v32 = vrot.slane %v724_v27, 4  ;;  %v734_v47 = vsel %vm723_vm3, %v733_v30, %v724_v27 }
 0x2a4   : > { %v735_v34 = vrot.slane %v720_v28, 4 }
 0x2a5   : > { %v721_v52 = vrot.slane %v667_v26, 2  ;;  %v725_v29 = vrot.slane %v667_v26, 4 }
 0x2a7   : > { %v722_v31 = vsel %vm445_vm1, %v719_v25, %v721_v52  ;;  %v726_v56 = vsel %vm723_vm3, %v724_v27, %v725_v29  ;;  %v743_v33 = vrot.slane %v725_v29, 4  ;;  %v741_v37 = vrot.slane %v721_v52, 4 }
 0x2a8   : > { %v736_v35 = vrot.slane %v722_v31, 4  ;;  %v739_v36 = vrot.slane %v726_v56, 4 }
 0x2aa   : > { %v737_v38 = vsel %vm723_vm3, %v735_v34, %v736_v35  ;;  %v740_v39 = vsel %vm723_vm3, %v738_v32, %v739_v36  ;;  %v744_v40 = vsel %vm723_vm3, %v739_v36, %v743_v33  ;;  %v742_v41 = vsel %vm723_vm3, %v736_v35, %v741_v37 }
 0x2ab   : > { %815 = vmatprep.mubr.f32.mxu0 %v737_v38  ;;  %1256 = vmatprep.mubr.f32.mxu1 %v740_v39 }
 0x2ac   : > { %816 = vmatmul.mubr.f32.vlgmr.msra.gmra.mrb[4].mxu0 %v734_v47  ;;  %1257 = vmatmul.mubr.f32.vlgmr.msra.gmra.mrb[2].mxu1 %v744_v40 }
 0x2ad   : > { %820 = vmatprep.mubr.f32.mxu0 %v742_v41 }
 0x2b0   : > { %821 = vmatmul.mubr.f32.gmra.mrb[6].mxu0 %v726_v56 }
 0x37f   : > { %v1165_v42 = vpop.f32.mrb[4].mxu0  ;;  %v1258_v43 = vpop.f32.mrb[2].mxu1 }
 0x380   : > { %v1166_v44 = vpop.f32.mrb[5].mxu0  ;;  %v892_v46 = vpop.f32.mrb[3].mxu1 }
 0x381   : > { %v1167_v48 = vadd.f32 %v1166_v44, %v1165_v42 }
 0x383   : > { %v818_v49 = vadd.f32 %v1167_v48, %v1067_v45  ;;  %v1168_v53 = vpop.f32.mrb[6].mxu0 }
 0x384   : > { %v1169_v54 = vpop.f32.mrb[7].mxu0 }
 0x385   : > { %v893_v55 = vadd.f32 %v892_v46, %v818_v49  ;;  %v1170_v57 = vadd.f32 %v1169_v54, %v1168_v53 }
 0x387   : > { %v823_v58 = vadd.f32 %v1170_v57, %v1067_v45  ;;  %901 = vadd.xlane.f32.xlu0 %v893_v55 }
 0x389   : > { %v898_v59 = vadd.f32 %v1258_v43, %v823_v58 }
 0x38b   : > { %903 = vadd.xlane.f32.xlu1 %v898_v59 }
 0x414   : > { %v902_v60 = vpop.xlane.xlu0 %901 }
 0x415   : > { %v905_v61 = vmul.f32 0.0078125, %v902_v60 }
 0x417   : > { %v907_v62 = vsub.f32 %v893_v55, %v905_v61 }
 0x418   : > { %v904_v63 = vpop.xlane.xlu1 %903 }
 0x419   : > { %v906_v0 = vmul.f32 0.0078125, %v904_v63  ;;  %v909_v1 = vmul.f32 %v907_v62, %v907_v62 }
 0x41b   : > { %v908_v2 = vsub.f32 %v898_v59, %v906_v0  ;;  %911 = vadd.xlane.f32.xlu0 %v909_v1 }
 0x41d   : > { %v910_v3 = vmul.f32 %v908_v2, %v908_v2 }
 0x41f   : > { %913 = vadd.xlane.f32.xlu1 %v910_v3 }
 0x4a8   : > { %v912_v4 = vpop.xlane.xlu0 %911 }
 0x4a9   : > { %v915_v5 = vmul.f32 0.0078125, %v912_v4 }
 0x4ab   : > { %v917_v6 = vadd.f32 1e-08, %v915_v5 }
 0x4ac   : > { %v914_v7 = vpop.xlane.xlu1 %913 }
 0x4ad   : > { %1463 = vrsqrt.f32 %v917_v6  ;;  %v916_v8 = vmul.f32 0.0078125, %v914_v7 }
 0x4af   : > { %v918_v9 = vadd.f32 1e-08, %v916_v8 }
 0x4b1   : > { %1465 = vrsqrt.f32 %v918_v9 }
 0x4b7   : > { %v1464_v10 = vpop.eup %1463 }
 0x4b8   : > { %v921_v12 = vmul.f32 %v1464_v10, %v907_v62 }
 0x4ba   : > { %v929_v14 = vmul.f32 %v1068_v11, %v921_v12 }
 0x4bb   : > { %v1466_v15 = vpop.eup %1465 }
 0x4bc   : > { %v937_v16 = vadd.f32 %v1069_v13, %v929_v14  ;;  %v922_v17 = vmul.f32 %v1466_v15, %v908_v2 }
 0x4be   : > { %v939_v18 = vmax.f32 %v937_v16, 0.0  ;;  %v930_v19 = vmul.f32 %v1068_v11, %v922_v17 }
 0x4c0   : > { %v941_v20 = vadd.f32 %v939_v18, %v1883_v50  ;;  %v938_v21 = vadd.f32 %v1069_v13, %v930_v19 }
 0x4c2   : > { %v940_v22 = vmax.f32 %v938_v21, 0.0  ;;  %943 = vst [vmem:[%s379_s18] sm:$0xff] %v941_v20 }
 0x4c4   : > { %v942_v23 = vadd.f32 %v940_v22, %v1886_v51 }
 0x4c6   : > { %944 = vst [vmem:[%s379_s18 + $0x8] sm:$0xff] %v942_v23 }
 0x4c7   : > { %1566 = shalt.err (!%p1563_p1)
}
 0x4c8   : > { %s1567_s24 = scalar_lea.hbm %s1949_s19, 256  ;;  %s1571_s18 = scalar_lea.hbm %s2005_s9, 512 }
 0x4c9   : > { %p1568_p13 = scmp.ne.s32.totalorder %s1949_s19, %s1567_s24  ;;  %p1572_p4 = scmp.lt.u32.totalorder %s1949_s19, %s2005_s9 }
 0x4ca   : > { %p1573_p5 = scmp.lt.u32.totalorder %s1571_s18, %s1567_s24  ;;  %p1575_p11 = scmp.lt.u32.totalorder %s1567_s24, %s1949_s19 }
 0x4cb   : > { %p1569_p6 = pnand %p1568_p13, %p2025_p0 }
 0x4cc   : > { %p1574_p8 = por %p1573_p5, %p1572_p4 }
 0x4cd   : > { %p1570_p10 = pneg %p1569_p6 }
 0x4ce   : > { %p1576_p2 = por %p1575_p11, %p1574_p8 }
 0x4d0   : > { %p1577_p3 = pnand %p1576_p2, %p1570_p10 }
 0x4d2   : > { %1580 = shalt.err (!%p1577_p3)
}
 0x4d3   : > { %s1632_s13 = smov 128   ;;  %s1633_s28 = smov 8  }
 0x4d4   : > { %1397 = dma.vmem_to_hbm [thread:$0]  (%p2025_p0), %s1951_s16, 256, %s1949_s19, %s946_s21, %s1632_s13, %s1632_s13, %s1633_s28  }
 0x4d5 PF: > { %s2026_s14 = sld [smem:[#allocation12_spill]]  ;;  %s974_s29 = sand.u32 1, %s1611_s30  }
 0x4d6   : > { %p2028_p9 = scmp.ge.s32.totalorder %s1623_s12, 2  ;;  %s975_s24 = scalar_lea.sflag [#allocation4], %s974_s29 }
 0x4db   : > { %p2027_p7 = scmp.ne.s32.totalorder %s2026_s14, 0 }
 0x4dd   : > { %p1411_p12 = pnand %p2028_p9, %p2027_p7 }
 0x4df   : > { %1606 = dma.done.wait (!%p1411_p12), %s975_s24, 256  }
 0x4e0   : > { %1608 = vsyncadd (!%p1411_p12), %s975_s24, 4294967040  ;;  %p23_p1 = scmp.ge.s32.totalorder %s1800_s20, 4   ;;  %s2029_s30 = smov %s1615_s10 }
 0x4e1   : > { %s2030_s10 = smov %s1619_s11  ;;  %s2031_s11 = smov %s1816_s27 }
 0x4e2   : > { %s2032_s12 = smov %s1800_s20  ;;  %25 = sbr.rel (!%p23_p1) target bundleno = 6 (0x6), region = 109 }
 0x4e9   :  { %980 = vsyncpa [#allocation3], 1 }
 0x4ea   :  { %982 = vsyncpa [#allocation3 + $0x1], 1 }
 0x4eb   :  { %983 = vsyncpa [#allocation6], 1 }
 0x4ec   :  { %984 = vsyncpa [#allocation4], 1 }
 0x4ed   :  { %986 = vsyncpa [#allocation4 + $0x1], 1 }

</bundles_post_ra>
